<compile_context>
chip_gen: v7x
topology: tpu7x:2x2x1
jax: 0.10.0
libtpu: 0.0.40
codegen_flags: <defaults>
</compile_context>

<pallas_src>
import functools

import jax
import jax.numpy as jnp
from jax.experimental import pallas as pl
from jax.experimental.pallas import tpu as pltpu


# ---------------------------------------------------------------------------
# GELU (tanh approximation), used identically in the kernels and the reference.
# TODO(synk): PyTorch nn.GELU() defaults to the exact erf formulation; erf is
# not a reliably-lowerable Mosaic elementwise op, so the tanh approximation is
# used consistently here (max abs deviation vs erf ~1e-3).
_SQRT_2_OVER_PI = 0.7978845608028654


def _gelu(x):
    return 0.5 * x * (1.0 + jnp.tanh(_SQRT_2_OVER_PI * (x + 0.044715 * x * x * x)))


def _pick_tile(n):
    """Largest row tile that keeps >=2 grid steps (v7x dual-TC) and divides n."""
    for t in (1024, 512, 256, 128, 64, 32, 16, 8):
        if n % t == 0 and n // t >= 2:
            return t
    return n  # tiny fallback: single block (fine for small demo sizes)


# ---------------------------------------------------------------------------
# Kernel 1: fused 1x1 conv + GELU   t = gelu(x @ W1 + b1)
# ---------------------------------------------------------------------------
def _pw_in_kernel(x_ref, w_ref, b_ref, o_ref):
    y = jnp.dot(x_ref[...], w_ref[...], preferred_element_type=jnp.float32)
    o_ref[...] = _gelu(y + b_ref[...])


def pointwise_in(x_flat, w, b, *, tile):
    n, c_in = x_flat.shape
    hid = w.shape[1]
    return pl.pallas_call(
        _pw_in_kernel,
        out_shape=jax.ShapeDtypeStruct((n, hid), jnp.float32),
        grid=(n // tile,),
        in_specs=[
            pl.BlockSpec((tile, c_in), lambda i: (i, 0)),
            pl.BlockSpec((c_in, hid), lambda i: (0, 0)),
            pl.BlockSpec((1, hid), lambda i: (0, 0)),
        ],
        out_specs=pl.BlockSpec((tile, hid), lambda i: (i, 0)),
        compiler_params=pltpu.CompilerParams(dimension_semantics=("parallel",)),
    )(x_flat, w, b)


# ---------------------------------------------------------------------------
# Kernel 2: fused depthwise 1x1 / 3x3 / 5x5 / 7x7 convs + GELU
#           one batch element per grid step, spatially zero-padded input.
# ---------------------------------------------------------------------------
def _dw_multiscale_kernel(tpad_ref, w21_ref, b21_ref, w22_ref, b22_ref,
                          w23_ref, b23_ref, w24_ref, b24_ref,
                          o1_ref, o2_ref, o3_ref, o4_ref, *, h, w, pad):
    # 1x1 depthwise: per-channel scale + bias on the un-padded center window.
    center = tpad_ref[0, pad:pad + h, pad:pad + w, :]          # (h, w, hid)
    o1_ref[0] = _gelu(center * w21_ref[0] + b21_ref[0])

    def dw_branch(k, wk_ref, bk_ref, out_ref):
        p = k // 2
        wk = wk_ref[...]                                        # (k, k, hid)
        acc = jnp.zeros((h, w, wk.shape[-1]), jnp.float32)
        for dy in range(k):
            for dx in range(k):
                oy = pad - p + dy
                ox = pad - p + dx
                acc = acc + tpad_ref[0, oy:oy + h, ox:ox + w, :] * wk[dy, dx]
        out_ref[0] = _gelu(acc + bk_ref[0])

    dw_branch(3, w22_ref, b22_ref, o2_ref)
    dw_branch(5, w23_ref, b23_ref, o3_ref)
    dw_branch(7, w24_ref, b24_ref, o4_ref)


def depthwise_multiscale(t_pad, w21, b21, w22, b22, w23, b23, w24, b24,
                         *, h, w, pad):
    bsz, hp, wp, hid = t_pad.shape
    kern = functools.partial(_dw_multiscale_kernel, h=h, w=w, pad=pad)
    out_sd = jax.ShapeDtypeStruct((bsz, h, w, hid), jnp.float32)

    def full(shape):
        return pl.BlockSpec(shape, lambda i, _s=len(shape): (0,) * _s)

    return pl.pallas_call(
        kern,
        out_shape=(out_sd,) * 4,
        grid=(bsz,),
        in_specs=[
            pl.BlockSpec((1, hp, wp, hid), lambda i: (i, 0, 0, 0)),
            full((1, hid)), full((1, hid)),
            full((3, 3, hid)), full((1, hid)),
            full((5, 5, hid)), full((1, hid)),
            full((7, 7, hid)), full((1, hid)),
        ],
        out_specs=(pl.BlockSpec((1, h, w, hid), lambda i: (i, 0, 0, 0)),) * 4,
        compiler_params=pltpu.CompilerParams(dimension_semantics=("parallel",)),
    )(t_pad, w21, b21, w22, b22, w23, b23, w24, b24)


# ---------------------------------------------------------------------------
# Kernel 3: fused output 1x1 conv with the channel-concat folded into
#           four weight chunks:  y = sum_i g_i @ W3_i + b3
# ---------------------------------------------------------------------------
def _pw_out_kernel(g1_ref, g2_ref, g3_ref, g4_ref,
                   w1_ref, w2_ref, w3_ref, w4_ref, b_ref, o_ref):
    acc = jnp.dot(g1_ref[...], w1_ref[...], preferred_element_type=jnp.float32)
    acc = acc + jnp.dot(g2_ref[...], w2_ref[...], preferred_element_type=jnp.float32)
    acc = acc + jnp.dot(g3_ref[...], w3_ref[...], preferred_element_type=jnp.float32)
    acc = acc + jnp.dot(g4_ref[...], w4_ref[...], preferred_element_type=jnp.float32)
    o_ref[...] = acc + b_ref[...]


def pointwise_out(g1, g2, g3, g4, w3_chunks, b3, *, tile):
    n, hid = g1.shape
    c_out = w3_chunks[0].shape[1]
    gspec = pl.BlockSpec((tile, hid), lambda i: (i, 0))
    wspec = pl.BlockSpec((hid, c_out), lambda i: (0, 0))
    return pl.pallas_call(
        _pw_out_kernel,
        out_shape=jax.ShapeDtypeStruct((n, c_out), jnp.float32),
        grid=(n // tile,),
        in_specs=[gspec, gspec, gspec, gspec, wspec, wspec, wspec, wspec,
                  pl.BlockSpec((1, c_out), lambda i: (0, 0))],
        out_specs=pl.BlockSpec((tile, c_out), lambda i: (i, 0)),
        compiler_params=pltpu.CompilerParams(dimension_semantics=("parallel",)),
    )(g1, g2, g3, g4, *w3_chunks, b3)


# ---------------------------------------------------------------------------
# Full forward pass (NCHW in / NCHW out, PyTorch convention)
# ---------------------------------------------------------------------------
def mlp_forward(x, params):
    b, c_in, h, w = x.shape
    hid = params["w1"].shape[1]
    pad = 3                                   # halo for the largest (7x7) dw conv
    n = b * h * w
    tile = _pick_tile(n)

    x_flat = jnp.transpose(x, (0, 2, 3, 1)).reshape(n, c_in)
    t = pointwise_in(x_flat, params["w1"], params["b1"], tile=tile)
    t = t.reshape(b, h, w, hid)
    t_pad = jnp.pad(t, ((0, 0), (pad, pad), (pad, pad), (0, 0)))

    g1, g2, g3, g4 = depthwise_multiscale(
        t_pad, params["w21"], params["b21"], params["w22"], params["b22"],
        params["w23"], params["b23"], params["w24"], params["b24"],
        h=h, w=w, pad=pad)

    y_flat = pointwise_out(
        g1.reshape(n, hid), g2.reshape(n, hid),
        g3.reshape(n, hid), g4.reshape(n, hid),
        params["w3_chunks"], params["b3"], tile=tile)

    return jnp.transpose(y_flat.reshape(b, h, w, c_in), (0, 3, 1, 2))


def convert_params(tw, hid):
    """Convert PyTorch-layout Conv2d weights into kernel-friendly layouts."""
    w1 = jnp.transpose(tw["conv1_w"][:, :, 0, 0])                 # (c_in, hid)
    w21 = tw["conv21_w"][:, 0, 0, 0].reshape(1, -1)               # (1, hid)
    w22 = jnp.transpose(tw["conv22_w"][:, 0], (1, 2, 0))          # (3, 3, hid)
    w23 = jnp.transpose(tw["conv23_w"][:, 0], (1, 2, 0))          # (5, 5, hid)
    w24 = jnp.transpose(tw["conv24_w"][:, 0], (1, 2, 0))          # (7, 7, hid)
    w3t = jnp.transpose(tw["conv3_w"][:, :, 0, 0])                # (4*hid, c_in)
    w3_chunks = tuple(w3t[i * hid:(i + 1) * hid] for i in range(4))
    return {
        "w1": w1, "b1": tw["conv1_b"].reshape(1, -1),
        "w21": w21, "b21": tw["conv21_b"].reshape(1, -1),
        "w22": w22, "b22": tw["conv22_b"].reshape(1, -1),
        "w23": w23, "b23": tw["conv23_b"].reshape(1, -1),
        "w24": w24, "b24": tw["conv24_b"].reshape(1, -1),
        "w3_chunks": w3_chunks, "b3": tw["conv3_b"].reshape(1, -1),
    }


# ---------------------------------------------------------------------------
# Pure-JAX reference mirroring the PyTorch forward (for verification)
# ---------------------------------------------------------------------------
def reference(x, tw):
    prec = jax.lax.Precision.HIGHEST
    dn = ("NCHW", "OIHW", "NCHW")

    def conv1x1(z, W, bias):
        y = jax.lax.conv_general_dilated(z, W, (1, 1), ((0, 0), (0, 0)),
                                         dimension_numbers=dn, precision=prec)
        return y + bias[None, :, None, None]

    def dwconv(z, W, bias, k):
        p = k // 2
        y = jax.lax.conv_general_dilated(
            z, W, (1, 1), ((p, p), (p, p)), dimension_numbers=dn,
            feature_group_count=z.shape[1], precision=prec)
        return y + bias[None, :, None, None]

    t = _gelu(conv1x1(x, tw["conv1_w"], tw["conv1_b"]))
    x1 = dwconv(t, tw["conv21_w"], tw["conv21_b"], 1)
    x2 = dwconv(t, tw["conv22_w"], tw["conv22_b"], 3)
    x3 = dwconv(t, tw["conv23_w"], tw["conv23_b"], 5)
    x4 = dwconv(t, tw["conv24_w"], tw["conv24_b"], 7)
    z = _gelu(jnp.concatenate([x1, x2, x3, x4], axis=1))
    return conv1x1(z, tw["conv3_w"], tw["conv3_b"])


if __name__ == "__main__":
    b, c_in, hid, h, w = 2, 64, 128, 16, 16

    key = jax.random.PRNGKey(0)
    ks = jax.random.split(key, 13)
    tw = {
        "conv1_w": 0.05 * jax.random.normal(ks[0], (hid, c_in, 1, 1), jnp.float32),
        "conv1_b": 0.01 * jax.random.normal(ks[1], (hid,), jnp.float32),
        "conv21_w": 0.05 * jax.random.normal(ks[2], (hid, 1, 1, 1), jnp.float32),
        "conv21_b": 0.01 * jax.random.normal(ks[3], (hid,), jnp.float32),
        "conv22_w": 0.05 * jax.random.normal(ks[4], (hid, 1, 3, 3), jnp.float32),
        "conv22_b": 0.01 * jax.random.normal(ks[5], (hid,), jnp.float32),
        "conv23_w": 0.05 * jax.random.normal(ks[6], (hid, 1, 5, 5), jnp.float32),
        "conv23_b": 0.01 * jax.random.normal(ks[7], (hid,), jnp.float32),
        "conv24_w": 0.05 * jax.random.normal(ks[8], (hid, 1, 7, 7), jnp.float32),
        "conv24_b": 0.01 * jax.random.normal(ks[9], (hid,), jnp.float32),
        "conv3_w": 0.05 * jax.random.normal(ks[10], (c_in, 4 * hid, 1, 1), jnp.float32),
        "conv3_b": 0.01 * jax.random.normal(ks[11], (c_in,), jnp.float32),
    }
    x = jax.random.normal(ks[12], (b, c_in, h, w), jnp.float32)

    params = convert_params(tw, hid)
    out = mlp_forward(x, params)
    jax.block_until_ready(out)

    out_ref = reference(x, tw)
    assert out.shape == (b, c_in, h, w)
    # Tolerance allows for default-precision MXU rounding of f32 operands;
    # observed error is far below this in practice.
    max_err = float(jnp.max(jnp.abs(out - out_ref)))
    assert jnp.allclose(out, out_ref, atol=2e-2, rtol=2e-2), max_err

    print("KERNEL_OK")
</pallas_src>

<mosaic_0001>
module attributes {stable_mosaic.version = 11 : i64} {
  func.func @_pw_in_kernel(%arg0: i32, %arg1: memref<256x64xf32, #tpu.memory_space<vmem>>, %arg2: memref<64x128xf32, #tpu.memory_space<vmem>>, %arg3: memref<1x128xf32, #tpu.memory_space<vmem>>, %arg4: memref<256x128xf32, #tpu.memory_space<vmem>>) attributes {dimension_semantics = [#tpu.dimension_semantics<parallel>], iteration_bounds = array<i64: 2>, scalar_prefetch = 0 : i64, scratch_operands = 0 : i64, tpu.core_type = #tpu.core_type<tc>, window_params = [{transform_indices = @transform_0, window_bounds = array<i64: 256, 64>}, {pipeline_mode = #tpu.pipeline_mode<synchronous>, transform_indices = @transform_1, window_bounds = array<i64: 64, 128>}, {pipeline_mode = #tpu.pipeline_mode<synchronous>, transform_indices = @transform_2, window_bounds = array<i64: 1, 128>}, {transform_indices = @transform_3, window_bounds = array<i64: 256, 128>}]} {
    %c0 = arith.constant 0 : index
    %c0_0 = arith.constant 0 : index
    %0 = vector.load %arg1[%c0, %c0_0] : memref<256x64xf32, #tpu.memory_space<vmem>>, vector<256x64xf32>
    %c0_1 = arith.constant 0 : index
    %c0_2 = arith.constant 0 : index
    %1 = vector.load %arg2[%c0_1, %c0_2] : memref<64x128xf32, #tpu.memory_space<vmem>>, vector<64x128xf32>
    %cst = arith.constant dense<0.000000e+00> : vector<256x128xf32>
    %2 = tpu.matmul %0, %1, %cst {dimension_numbers = #tpu.dot_dimension_numbers<[1], [0], [0], [1], [0, 0, 1, 1], [], []>} : vector<256x64xf32>, vector<64x128xf32>, vector<256x128xf32> -> vector<256x128xf32>
    %c0_3 = arith.constant 0 : index
    %c0_4 = arith.constant 0 : index
    %3 = vector.load %arg3[%c0_3, %c0_4] : memref<1x128xf32, #tpu.memory_space<vmem>>, vector<1x128xf32>
    %4 = vector.broadcast %3 : vector<1x128xf32> to vector<256x128xf32>
    %5 = arith.addf %2, %4 : vector<256x128xf32>
    %cst_5 = arith.constant 5.000000e-01 : f32
    %6 = vector.broadcast %cst_5 : f32 to vector<256x128xf32>
    %7 = arith.mulf %6, %5 : vector<256x128xf32>
    %cst_6 = arith.constant 4.471500e-02 : f32
    %8 = vector.broadcast %cst_6 : f32 to vector<256x128xf32>
    %9 = arith.mulf %8, %5 : vector<256x128xf32>
    %10 = arith.mulf %9, %5 : vector<256x128xf32>
    %11 = arith.mulf %10, %5 : vector<256x128xf32>
    %12 = arith.addf %5, %11 : vector<256x128xf32>
    %cst_7 = arith.constant 0.797884583 : f32
    %13 = vector.broadcast %cst_7 : f32 to vector<256x128xf32>
    %14 = arith.mulf %13, %12 : vector<256x128xf32>
    %15 = math.tanh %14 : vector<256x128xf32>
    %cst_8 = arith.constant 1.000000e+00 : f32
    %16 = vector.broadcast %cst_8 : f32 to vector<256x128xf32>
    %17 = arith.addf %16, %15 : vector<256x128xf32>
    %18 = arith.mulf %7, %17 : vector<256x128xf32>
    %c0_9 = arith.constant 0 : index
    %c0_10 = arith.constant 0 : index
    %19 = vector.load %arg4[%c0_9, %c0_10] : memref<256x128xf32, #tpu.memory_space<vmem>>, vector<256x128xf32>
    tpu.vector_store %arg4[%c0_9, %c0_10], %18 {strides = array<i32>} : memref<256x128xf32, #tpu.memory_space<vmem>>, vector<256x128xf32>,
    return
  }
  func.func @transform_0(%arg0: i32) -> (i32, i32) {
    %c0_i32 = arith.constant 0 : i32
    %c0_i32_0 = arith.constant 0 : i32
    return %arg0, %c0_i32 : i32, i32
  }
  func.func @transform_1(%arg0: i32) -> (i32, i32) {
    %c0_i32 = arith.constant 0 : i32
    %c0_i32_0 = arith.constant 0 : i32
    %c0_i32_1 = arith.constant 0 : i32
    return %c0_i32, %c0_i32_0 : i32, i32
  }
  func.func @transform_2(%arg0: i32) -> (i32, i32) {
    %c0_i32 = arith.constant 0 : i32
    %c0_i32_0 = arith.constant 0 : i32
    %c0_i32_1 = arith.constant 0 : i32
    return %c0_i32, %c0_i32_0 : i32, i32
  }
  func.func @transform_3(%arg0: i32) -> (i32, i32) {
    %c0_i32 = arith.constant 0 : i32
    %c0_i32_0 = arith.constant 0 : i32
    return %arg0, %c0_i32 : i32, i32
  }
}

</mosaic_0001>

<bundles_post_ra>
// kernel: tpu_custom_call.1
= control target key start
LH: loop header
LB: loop body
LE: loop exit
PB: predicated region body
PF: predicated region fallthrough
CT: control target
= control target key end

     0   :  { %8 = vsyncpa [#allocation3], 0  ;;  %s1845_s0 = inlined_call_operand.vmem [shape: f32[512,64], index: 0, kind: input, shape index: {}]   ;;  %s1846_s1 = inlined_call_operand.vmem [shape: f32[64,128], index: 1, kind: input, shape index: {}]   ;;  %s1847_s2 = inlined_call_operand.vmem [shape: f32[1,128], index: 2, kind: input, shape index: {}]   ;;  %s1848_s3 = inlined_call_operand.hbm [shape: f32[512,128], index: 3, kind: output, shape index: {}]  }
   0x1   :  { %10 = vsyncpa [#allocation3 + $0x1], 0  ;;  %s1303_s12 = smov 0   ;;  %s1305_s13 = smov 0  }
   0x2   :  { %s1307_s14 = smov 0   ;;  %s1309_s15 = smov 0  }
   0x3 LB: > { %s1324_s16 = sadd.s32 4294967295, %s1278_s15   ;;  %s937_s17 = sadd.s32 4294967294, %s1278_s15   ;;  %s1278_s15 = sphi %s1309_s15, %s1854_s15   ;;  %s1274_s14 = sphi %s1307_s14, %s1853_s14   ;;  %s1270_s13 = sphi %s1305_s13, %s1852_s13   ;;  %s1266_s12 = sphi %s1303_s12, %s1851_s12  }
   0x4   : > { %s1328_s18 = sadd.s32 1, %s1278_s15   ;;  %s91_s19 = sadd.s32 1, %s1274_s14 }
   0x5   : > { %s88_s20 = ssub.s32 %s1278_s15, %s1328_s18  ;;  %p101_p0 = scmp.ne.s32.totalorder %s1274_s14, %s1270_s13 }
   0x6   : > { %p89_p1 = scmp.eq.s32.totalorder %s88_s20, 0  ;;  %p102_p2 = scmp.eq.s32.totalorder %s1324_s16, 1 }
   0x7   : > { %p107_p3 = scmp.ne.s32.totalorder %s1270_s13, %s1266_s12  ;;  %p108_p4 = scmp.eq.s32.totalorder %s937_s17, 1 }
   0x8   : > { %s1339_s21 = scalar_select %p89_p1, %s1274_s14, %s91_s19  }
   0x9   : > { %p1341_p5 = por %p102_p2, %p101_p0  ;;  %p1345_p6 = por %p108_p4, %p107_p3 }
   0xa   : > { %p940_p7 = scmp.ge.s32.totalorder %s1278_s15, 1  ;;  %p141_p8 = scmp.lt.s32.totalorder %s1278_s15, 3 }
   0xc   : > { %p142_p9 = pnand %p940_p7, %p141_p8 }
   0xd   : > { %v204_v0 = vld [vmem:[%s1846_s1] sm:$0xff] (!%p142_p9)  ;;  %v205_v1 = vld [vmem:[%s1846_s1 + $0x8] sm:$0xff] (!%p142_p9)  ;;  %v206_v2 = vld [vmem:[%s1846_s1 + $0x10] sm:$0xff] (!%p142_p9)  ;;  %s942_s30 = sshll.u32 (!%p142_p9), %s1324_s16, 5  ;;  %vm219_vm0 = vcmask (!%p142_p9), 523264   ;;  %s162_s29 = sand.u32 (!%p142_p9), 1, %s1270_s13  }
   0xe   : > { %145 = sbr.rel (%p142_p9) target bundleno = 355 (0x163), region = 32  ;;  %v1087_v3 = vpack.c.bf16 (!%p142_p9), %v205_v1, %v204_v0  ;;  %v207_v4 = vld [vmem:[%s1846_s1 + $0x18] sm:$0xff] (!%p142_p9)  ;;  %p166_p10 = scmp.lt.s32.totalorder (!%p142_p9), %s942_s30, 63  ;;  %v208_v6 = vld [vmem:[%s1846_s1 + $0x20] sm:$0xff] (!%p142_p9)  ;;  %v209_v7 = vld [vmem:[%s1846_s1 + $0x28] sm:$0xff] (!%p142_p9) }
   0xf   : > { %v1091_v5 = vpack.c.bf16 (!%p142_p9), %v207_v4, %v206_v2  ;;  %v1095_v8 = vpack.c.bf16 (!%p142_p9), %v209_v7, %v208_v6  ;;  %v210_v9 = vld [vmem:[%s1846_s1 + $0x30] sm:$0xff] (!%p142_p9)  ;;  %v211_v10 = vld [vmem:[%s1846_s1 + $0x38] sm:$0xff] (!%p142_p9)  ;;  %v1448_v44 = vld [vmem:[%s1847_s2] ss:$0 sm:$0xff] (!%p142_p9)  ;;  %s982_s5 = sshll.u32 (!%p142_p9), %s1324_s16, 12  ;;  %s1804_s16 = scalar_lea.sflag (!%p142_p9), [#allocation3], %s162_s29 }
  0x10   : > { %1088 = vmatprep.subr.bf16.mxu0 (!%p142_p9), %v1087_v3  ;;  %1103 = vmatprep.subr.bf16.mxu1 (!%p142_p9), %v1087_v3  ;;  %v1099_v13 = vpack.c.bf16 (!%p142_p9), %v211_v10, %v210_v9  ;;  %s1796_s9 = scalar_lea.hbm (!%p142_p9), %s1848_s3, %s982_s5  ;;  %s1280_s11 = smov (!%p142_p9), [#allocation2]  }
  0x11   : > { %1090 = vmatpush3.bf16.msra.mxu0 (!%p142_p9), %v1087_v3  ;;  %1107 = vmatpush3.bf16.msra.mxu1 (!%p142_p9), %v1087_v3  ;;  %s1220_s17 = sshll.u32 (!%p142_p9), %s1280_s11, 4  ;;  %s1221_s17 = int_to_ptr.vmem [resolvable:$false] %s1220_s17 }
  0x12   : > { %1092 = vmatprep.subr.bf16.mxu0 (!%p142_p9), %v1091_v5  ;;  %1104 = vmatprep.subr.bf16.mxu1 (!%p142_p9), %v1091_v5  ;;  %s1222_s19 = scalar_lea.vmem (!%p142_p9), %s1221_s17, 8192 }
  0x15   : > { %s1856_s30 = smov (!%p166_p10, %s942_s30), 63  ;;  %1094 = vmatpush3.bf16.msra.mxu0 %v1091_v5  ;;  %1108 = vmatpush3.bf16.msra.mxu1 %v1091_v5 }
  0x16   : > { %s943_s10 = sshll.u32 %s1856_s30, 3  ;;  %1096 = vmatprep.subr.bf16.mxu0 %v1095_v8  ;;  %1105 = vmatprep.subr.bf16.mxu1 %v1095_v8  ;;  %s1543_s30 = sshll.u32 %s162_s29, 8 }
  0x17   : > { %s1379_s26 = scalar_lea.vmem %s1845_s0, %s943_s10  ;;  %s1577_s4 = scalar_lea.vmem [#allocation2], %s1543_s30 }
  0x18   : > { %v172_v11 = vld [vmem:[%s1379_s26] sm:$0xff]  ;;  %v173_v14 = vld [vmem:[%s1379_s26 + $0x8] sm:$0xff]  ;;  %v174_v16 = vld [vmem:[%s1379_s26 + $0x10] sm:$0xff]  ;;  %s875_s6 = sshll.u32 %s1577_s4, 4  ;;  %s1798_s6 = int_to_ptr.vmem [resolvable:$true] %s875_s6 }
  0x19   : > { %v188_v12 = vld [vmem:[%s1379_s26 + $0x80] sm:$0xff]  ;;  %1039 = vmatprep.mubr.msk.f32.mxu0 %vm219_vm0, %v172_v11  ;;  %1098 = vmatpush3.bf16.msra.mxu0 %v1095_v8  ;;  %v189_v15 = vld [vmem:[%s1379_s26 + $0x88] sm:$0xff]  ;;  %v190_v17 = vld [vmem:[%s1379_s26 + $0x90] sm:$0xff]  ;;  %s1216_s10 = scalar_lea.vmem %s1798_s6, 4096  ;;  %p1223_p0 = scmp.lt.s32.totalorder %s1798_s6, %s1221_s17 }
  0x1a   : > { %1063 = vmatprep.mubr.msk.f32.mxu1 %vm219_vm0, %v188_v12  ;;  %1109 = vmatpush3.bf16.msra.mxu1 %v1095_v8  ;;  %v175_v18 = vld [vmem:[%s1379_s26 + $0x18] sm:$0xff]  ;;  %v176_v20 = vld [vmem:[%s1379_s26 + $0x20] sm:$0xff]  ;;  %v177_v22 = vld [vmem:[%s1379_s26 + $0x28] sm:$0xff]  ;;  %p1217_p11 = scmp.ne.s32.totalorder %s1798_s6, %s1216_s10  ;;  %p1224_p1 = scmp.lt.s32.totalorder %s1222_s19, %s1216_s10 }
  0x1b   : > { %1100 = vmatprep.subr.bf16.mxu0 %v1099_v13  ;;  %1106 = vmatprep.subr.bf16.mxu1 %v1099_v13  ;;  %v191_v19 = vld [vmem:[%s1379_s26 + $0x98] sm:$0xff]  ;;  %v192_v21 = vld [vmem:[%s1379_s26 + $0xa0] sm:$0xff]  ;;  %v193_v23 = vld [vmem:[%s1379_s26 + $0xa8] sm:$0xff] }
  0x1c   : > { %v178_v24 = vld [vmem:[%s1379_s26 + $0x30] sm:$0xff]  ;;  %v179_v26 = vld [vmem:[%s1379_s26 + $0x38] sm:$0xff]  ;;  %v180_v28 = vld [vmem:[%s1379_s26 + $0x40] sm:$0xff]  ;;  %p1218_p12 = pnand %p1217_p11, %p1341_p5  ;;  %p1225_p2 = por %p1224_p1, %p1223_p0 }
  0x1d   : > { %1102 = vmatpush3.bf16.msra.mxu0 %v1099_v13  ;;  %v194_v25 = vld [vmem:[%s1379_s26 + $0xb0] sm:$0xff]  ;;  %v195_v27 = vld [vmem:[%s1379_s26 + $0xb8] sm:$0xff]  ;;  %v196_v29 = vld [vmem:[%s1379_s26 + $0xc0] sm:$0xff] }
  0x1e   : > { %1110 = vmatpush3.bf16.msra.mxu1 %v1099_v13  ;;  %v181_v30 = vld [vmem:[%s1379_s26 + $0x48] sm:$0xff]  ;;  %v182_v32 = vld [vmem:[%s1379_s26 + $0x50] sm:$0xff]  ;;  %v183_v34 = vld [vmem:[%s1379_s26 + $0x58] sm:$0xff]  ;;  %p1219_p13 = pneg %p1218_p12 }
  0x1f   : > { %v197_v31 = vld [vmem:[%s1379_s26 + $0xc8] sm:$0xff]  ;;  %v198_v33 = vld [vmem:[%s1379_s26 + $0xd0] sm:$0xff]  ;;  %v199_v35 = vld [vmem:[%s1379_s26 + $0xd8] sm:$0xff] }
  0x20   : > { %1040 = vmatmul.mubr.msk.f32.vlgmr.msra.gmra.mrb[0].mxu0 %vm219_vm0, %v173_v14  ;;  %v184_v36 = vld [vmem:[%s1379_s26 + $0x60] sm:$0xff]  ;;  %v185_v38 = vld [vmem:[%s1379_s26 + $0x68] sm:$0xff]  ;;  %v186_v40 = vld [vmem:[%s1379_s26 + $0x70] sm:$0xff]  ;;  %p1226_p3 = pnand %p1225_p2, %p1219_p13 }
  0x21   : > { %1064 = vmatmul.mubr.msk.f32.vlgmr.msra.gmra.mrb[0].mxu1 %vm219_vm0, %v189_v15  ;;  %1042 = vmatprep.mubr.msk.f32.mxu0 %vm219_vm0, %v174_v16  ;;  %v200_v37 = vld [vmem:[%s1379_s26 + $0xe0] sm:$0xff]  ;;  %v201_v39 = vld [vmem:[%s1379_s26 + $0xe8] sm:$0xff]  ;;  %v202_v41 = vld [vmem:[%s1379_s26 + $0xf0] sm:$0xff] }
  0x22   : > { %1066 = vmatprep.mubr.msk.f32.mxu1 %vm219_vm0, %v190_v17  ;;  %v187_v42 = vld [vmem:[%s1379_s26 + $0x78] sm:$0xff] }
  0x23   : > { %v203_v43 = vld [vmem:[%s1379_s26 + $0xf8] sm:$0xff] }
  0x24   : > { %1043 = vmatmul.mubr.msk.f32.gmra.mrb[2].mxu0 %vm219_vm0, %v175_v18 }
  0x25   : > { %1067 = vmatmul.mubr.msk.f32.gmra.mrb[2].mxu1 %vm219_vm0, %v191_v19  ;;  %1045 = vmatprep.mubr.msk.f32.mxu0 %vm219_vm0, %v176_v20 }
  0x26   : > { %1069 = vmatprep.mubr.msk.f32.mxu1 %vm219_vm0, %v192_v21 }
  0x28   : > { %1046 = vmatmul.mubr.msk.f32.gmra.mrb[4].mxu0 %vm219_vm0, %v177_v22 }
  0x29   : > { %1070 = vmatmul.mubr.msk.f32.gmra.mrb[4].mxu1 %vm219_vm0, %v193_v23  ;;  %1048 = vmatprep.mubr.msk.f32.mxu0 %vm219_vm0, %v178_v24 }
  0x2a   : > { %1072 = vmatprep.mubr.msk.f32.mxu1 %vm219_vm0, %v194_v25 }
  0x2c   : > { %1049 = vmatmul.mubr.msk.f32.gmra.mrb[6].mxu0 %vm219_vm0, %v179_v26 }
  0x2d   : > { %1073 = vmatmul.mubr.msk.f32.gmra.mrb[6].mxu1 %vm219_vm0, %v195_v27  ;;  %1051 = vmatprep.mubr.msk.f32.mxu0 %vm219_vm0, %v180_v28 }
  0x2e   : > { %1075 = vmatprep.mubr.msk.f32.mxu1 %vm219_vm0, %v196_v29 }
  0x30   : > { %1052 = vmatmul.mubr.msk.f32.gmra.mrb[8].mxu0 %vm219_vm0, %v181_v30 }
  0x31   : > { %1076 = vmatmul.mubr.msk.f32.gmra.mrb[8].mxu1 %vm219_vm0, %v197_v31  ;;  %1054 = vmatprep.mubr.msk.f32.mxu0 %vm219_vm0, %v182_v32 }
  0x32   : > { %1078 = vmatprep.mubr.msk.f32.mxu1 %vm219_vm0, %v198_v33 }
  0x34   : > { %1055 = vmatmul.mubr.msk.f32.gmra.mrb[10].mxu0 %vm219_vm0, %v183_v34 }
  0x35   : > { %1079 = vmatmul.mubr.msk.f32.gmra.mrb[10].mxu1 %vm219_vm0, %v199_v35  ;;  %1057 = vmatprep.mubr.msk.f32.mxu0 %vm219_vm0, %v184_v36 }
  0x36   : > { %1081 = vmatprep.mubr.msk.f32.mxu1 %vm219_vm0, %v200_v37 }
  0x38   : > { %1058 = vmatmul.mubr.msk.f32.gmra.mrb[12].mxu0 %vm219_vm0, %v185_v38 }
  0x39   : > { %1082 = vmatmul.mubr.msk.f32.gmra.mrb[12].mxu1 %vm219_vm0, %v201_v39  ;;  %1060 = vmatprep.mubr.msk.f32.mxu0 %vm219_vm0, %v186_v40 }
  0x3a   : > { %1084 = vmatprep.mubr.msk.f32.mxu1 %vm219_vm0, %v202_v41 }
  0x3c   : > { %1061 = vmatmul.mubr.msk.f32.gmra.mrb[14].mxu0 %vm219_vm0, %v187_v42 }
  0x3d   : > { %1085 = vmatmul.mubr.msk.f32.gmra.mrb[14].mxu1 %vm219_vm0, %v203_v43 }
  0xf3   : > { %v1041_v45 = vpop.f32.mrb[0].mxu0 }
  0xf4   : > { %v1065_v46 = vpop.f32.mrb[0].mxu1  ;;  %v388_v47 = vadd.f32 %v1041_v45, %v1448_v44  ;;  %v382_v49 = vpop.f32.mrb[1].mxu0 }
  0xf5   : > { %v1452_v48 = vadd.f32 %v1065_v46, %v1448_v44  ;;  %v462_v50 = vpop.f32.mrb[1].mxu1  ;;  %v1455_v51 = vadd.f32 %v1448_v44, %v382_v49 }
  0xf6   : > { %v1458_v52 = vadd.f32 %v1448_v44, %v462_v50  ;;  %v574_v53 = vmul.f32 0.044715, %v388_v47  ;;  %v542_v40 = vmul.f32 0.5, %v388_v47 }
  0xf7   : > { %v590_v54 = vmul.f32 0.044715, %v1452_v48  ;;  %v573_v55 = vmul.f32 0.044715, %v1455_v51  ;;  %v1044_v59 = vpop.f32.mrb[2].mxu0  ;;  %v558_v45 = vmul.f32 0.5, %v1452_v48 }
  0xf8   : > { %v589_v56 = vmul.f32 0.044715, %v1458_v52  ;;  %v606_v57 = vmul.f32 %v574_v53, %v388_v47  ;;  %v1068_v60 = vpop.f32.mrb[2].mxu1  ;;  %v1467_v63 = vadd.f32 %v1044_v59, %v1448_v44  ;;  %v392_v1 = vpop.f32.mrb[3].mxu0 }
  0xf9   : > { %v622_v58 = vmul.f32 %v590_v54, %v1452_v48  ;;  %v605_v61 = vmul.f32 %v573_v55, %v1455_v51  ;;  %v1470_v0 = vadd.f32 %v1068_v60, %v1448_v44  ;;  %v472_v2 = vpop.f32.mrb[3].mxu1  ;;  %v1474_v5 = vadd.f32 %v1448_v44, %v392_v1 }
  0xfa   : > { %v621_v62 = vmul.f32 %v589_v56, %v1458_v52  ;;  %v638_v3 = vmul.f32 %v606_v57, %v388_v47  ;;  %v576_v8 = vmul.f32 0.044715, %v1467_v63  ;;  %v1482_v14 = vadd.f32 %v1448_v44, %v472_v2 }
  0xfb   : > { %v654_v4 = vmul.f32 %v622_v58, %v1452_v48  ;;  %v637_v6 = vmul.f32 %v605_v61, %v1455_v51  ;;  %v1047_v9 = vpop.f32.mrb[4].mxu0  ;;  %v592_v13 = vmul.f32 0.044715, %v1470_v0  ;;  %v575_v23 = vmul.f32 0.044715, %v1474_v5 }
  0xfc   : > { %v653_v7 = vmul.f32 %v621_v62, %v1458_v52  ;;  %v1071_v10 = vpop.f32.mrb[4].mxu1  ;;  %v670_v11 = vadd.f32 %v638_v3, %v388_v47  ;;  %v402_v15 = vpop.f32.mrb[5].mxu0  ;;  %v608_v19 = vmul.f32 %v576_v8, %v1467_v63  ;;  %v591_v30 = vmul.f32 0.044715, %v1482_v14 }
  0xfd   : > { %v686_v12 = vadd.f32 %v654_v4, %v1452_v48  ;;  %v482_v16 = vpop.f32.mrb[5].mxu1  ;;  %v669_v17 = vadd.f32 %v637_v6, %v1455_v51  ;;  %v624_v22 = vmul.f32 %v592_v13, %v1470_v0  ;;  %v607_v29 = vmul.f32 %v575_v23, %v1474_v5 }
  0xfe   : > { %v685_v18 = vadd.f32 %v653_v7, %v1458_v52  ;;  %v702_v20 = vmul.f32 0.7978846, %v670_v11  ;;  %v640_v26 = vmul.f32 %v608_v19, %v1467_v63  ;;  %v1497_v34 = vadd.f32 %v1047_v9, %v1448_v44 }
  0xff   : > { %v718_v21 = vmul.f32 0.7978846, %v686_v12  ;;  %v701_v24 = vmul.f32 0.7978846, %v669_v17  ;;  %v1050_v27 = vpop.f32.mrb[6].mxu0  ;;  %v656_v28 = vmul.f32 %v624_v22, %v1470_v0  ;;  %v1500_v35 = vadd.f32 %v1071_v10, %v1448_v44 }
 0x100   : > { %v717_v25 = vmul.f32 0.7978846, %v685_v18  ;;  %1152 = vtanh.f32 %v702_v20  ;;  %v1074_v31 = vpop.f32.mrb[6].mxu1  ;;  %v1493_v32 = vpop.f32.mrb[7].mxu0  ;;  %v672_v33 = vadd.f32 %v640_v26, %v1467_v63  ;;  %v639_v38 = vmul.f32 %v607_v29, %v1474_v5 }
 0x101   : > { %1154 = vtanh.f32 %v718_v21  ;;  %v1502_v36 = vpop.f32.mrb[7].mxu1  ;;  %v688_v37 = vadd.f32 %v656_v28, %v1470_v0  ;;  %v623_v39 = vmul.f32 %v591_v30, %v1482_v14  ;;  %v578_v42 = vmul.f32 0.044715, %v1497_v34 }
 0x102   : > { %1156 = vtanh.f32 %v701_v24  ;;  %v704_v41 = vmul.f32 0.7978846, %v672_v33  ;;  %v671_v49 = vadd.f32 %v639_v38, %v1474_v5  ;;  %v594_v55 = vmul.f32 0.044715, %v1500_v35 }
 0x103   : > { %1158 = vtanh.f32 %v717_v25  ;;  %v1508_v43 = vpop.f32.mrb[8].mxu0  ;;  %v720_v46 = vmul.f32 0.7978846, %v688_v37  ;;  %v655_v50 = vmul.f32 %v623_v39, %v1482_v14  ;;  %v610_v47 = vmul.f32 %v578_v42, %v1497_v34 }
 0x104   : > { %v1513_v53 = vpop.f32.mrb[8].mxu1  ;;  %v1515_v54 = vpop.f32.mrb[9].mxu0  ;;  %1160 = vtanh.f32 %v704_v41  ;;  %v1520_v56 = vadd.f32 %v1448_v44, %v402_v15  ;;  %v703_v48 = vmul.f32 0.7978846, %v671_v49  ;;  %v1527_v59 = vadd.f32 %v1448_v44, %v482_v16 }
 0x105   : > { %v1522_v57 = vpop.f32.mrb[9].mxu1  ;;  %1162 = vtanh.f32 %v720_v46  ;;  %v687_v58 = vadd.f32 %v655_v50, %v1482_v14  ;;  %v541_v60 = vmul.f32 0.5, %v1455_v51  ;;  %v642_v61 = vmul.f32 %v610_v47, %v1497_v34 }
 0x106   : > { %v626_v62 = vmul.f32 %v594_v55, %v1500_v35  ;;  %v577_v1 = vmul.f32 0.044715, %v1520_v56  ;;  %v557_v4 = vmul.f32 0.5, %v1458_v52  ;;  %1164 = vtanh.f32 %v703_v48 }
 0x107   : > { %v1533_v2 = vpop.f32.mrb[10].mxu0  ;;  %v719_v6 = vmul.f32 0.7978846, %v687_v58  ;;  %v593_v7 = vmul.f32 0.044715, %v1527_v59  ;;  %v674_v51 = vadd.f32 %v642_v61, %v1497_v34  ;;  %v1549_v11 = vadd.f32 %v1050_v27, %v1448_v44 }
 0x108   : > { %v1535_v3 = vpop.f32.mrb[10].mxu1  ;;  %v1539_v8 = vpop.f32.mrb[11].mxu0  ;;  %v658_v9 = vmul.f32 %v626_v62, %v1500_v35  ;;  %v609_v10 = vmul.f32 %v577_v1, %v1520_v56  ;;  %v544_v13 = vmul.f32 0.5, %v1467_v63  ;;  %v1556_v16 = vadd.f32 %v1074_v31, %v1448_v44 }
 0x109   : > { %v1551_v12 = vpop.f32.mrb[11].mxu1  ;;  %1166 = vtanh.f32 %v719_v6  ;;  %v625_v15 = vmul.f32 %v593_v7, %v1527_v59  ;;  %v706_v19 = vmul.f32 0.7978846, %v674_v51  ;;  %v580_v26 = vmul.f32 0.044715, %v1549_v11 }
 0x10a   : > { %v1153_v52 = vpop.eup %1152  ;;  %v690_v20 = vadd.f32 %v658_v9, %v1500_v35  ;;  %v641_v21 = vmul.f32 %v609_v10, %v1520_v56  ;;  %v1568_v27 = vadd.f32 %v1448_v44, %v1493_v32  ;;  %v560_v49 = vmul.f32 0.5, %v1470_v0 }
 0x10b   : > { %v1155_v17 = vpop.eup %1154  ;;  %v766_v18 = vadd.f32 1.0, %v1153_v52  ;;  %v1560_v22 = vpop.f32.mrb[12].mxu0  ;;  %v657_v63 = vmul.f32 %v625_v15, %v1527_v59  ;;  %1168 = vtanh.f32 %v706_v19  ;;  %v543_v0 = vmul.f32 0.5, %v1474_v5 }
 0x10c   : > { %v1562_v23 = vpop.f32.mrb[12].mxu1  ;;  %v1157_v24 = vpop.eup %1156  ;;  %v782_v25 = vadd.f32 1.0, %v1155_v17  ;;  %v722_v37 = vmul.f32 0.7978846, %v690_v20  ;;  %v673_v41 = vadd.f32 %v641_v21, %v1520_v56  ;;  %v596_v6 = vmul.f32 0.044715, %v1556_v16 }
 0x10d   : > { %v1570_v28 = vpop.f32.mrb[13].mxu0  ;;  %v1572_v29 = vpop.f32.mrb[13].mxu1  ;;  %v798_v31 = vmul.f32 %v766_v18, %v542_v40  ;;  %v765_v33 = vadd.f32 1.0, %v1157_v24  ;;  %v689_v42 = vadd.f32 %v657_v63, %v1527_v59  ;;  %v612_v40 = vmul.f32 %v580_v26, %v1549_v11 }
 0x10e   : > { %v1159_v30 = vpop.eup %1158  ;;  %v814_v38 = vmul.f32 %v782_v25, %v558_v45  ;;  %1170 = vtanh.f32 %v722_v37  ;;  %v705_v58 = vmul.f32 0.7978846, %v673_v41  ;;  %v579_v9 = vmul.f32 0.044715, %v1568_v27 }
 0x10f   : > { %v781_v39 = vadd.f32 1.0, %v1159_v30  ;;  %v1161_v46 = vpop.eup %1160  ;;  %830 = vst [vmem:[%s1577_s4 + $0x8] sm:$0xff] %v798_v31  ;;  %v797_v32 = vmul.f32 %v765_v33, %v541_v60  ;;  %v1582_v50 = vpop.f32.mrb[14].mxu0  ;;  %v721_v61 = vmul.f32 0.7978846, %v689_v42  ;;  %v644_v1 = vmul.f32 %v612_v40, %v1549_v11 }
 0x110   : > { %v1584_v45 = vpop.f32.mrb[14].mxu1  ;;  %v1163_v47 = vpop.eup %1162  ;;  %846 = vst [vmem:[%s1577_s4 + $0x88] sm:$0xff] %v814_v38  ;;  %v768_v48 = vadd.f32 1.0, %v1161_v46  ;;  %1172 = vtanh.f32 %v705_v58  ;;  %v1599_v10 = vadd.f32 %v1448_v44, %v1502_v36  ;;  %v559_v18 = vmul.f32 0.5, %v1482_v14 }
 0x111   : > { %v813_v55 = vmul.f32 %v781_v39, %v557_v4  ;;  %v1587_v62 = vpop.f32.mrb[15].mxu0  ;;  %829 = vst [vmem:[%s1577_s4] sm:$0xff] %v797_v32  ;;  %v784_v60 = vadd.f32 1.0, %v1163_v47  ;;  %v1593_v7 = vpop.f32.mrb[15].mxu1  ;;  %1174 = vtanh.f32 %v721_v61  ;;  %v676_v5 = vadd.f32 %v644_v1, %v1549_v11 }
 0x112   : > { %v1165_v51 = vpop.eup %1164  ;;  %v800_v4 = vmul.f32 %v768_v48, %v544_v13  ;;  %v628_v19 = vmul.f32 %v596_v6, %v1556_v16  ;;  %v611_v13 = vmul.f32 %v579_v9, %v1568_v27  ;;  %v595_v20 = vmul.f32 0.044715, %v1599_v10 }
 0x113   : > { %845 = vst [vmem:[%s1577_s4 + $0x80] sm:$0xff] %v813_v55  ;;  %v816_v52 = vmul.f32 %v784_v60, %v560_v49  ;;  %v767_v15 = vadd.f32 1.0, %v1165_v51  ;;  %v1167_v17 = vpop.eup %1166  ;;  %v708_v24 = vmul.f32 0.7978846, %v676_v5  ;;  %v1610_v25 = vadd.f32 %v1508_v43, %v1448_v44 }
 0x114   : > { %832 = vst [vmem:[%s1577_s4 + $0x18] sm:$0xff] %v800_v4  ;;  %v783_v36 = vadd.f32 1.0, %v1167_v17  ;;  %v660_v63 = vmul.f32 %v628_v19, %v1556_v16  ;;  %v643_v26 = vmul.f32 %v611_v13, %v1568_v27  ;;  %v627_v14 = vmul.f32 %v595_v20, %v1599_v10 }
 0x115   : > { %848 = vst [vmem:[%s1577_s4 + $0x98] sm:$0xff] %v816_v52  ;;  %v799_v21 = vmul.f32 %v767_v15, %v543_v0  ;;  %v1617_v30 = vadd.f32 %v1513_v53, %v1448_v44  ;;  %v1169_v31 = vpop.eup %1168  ;;  %v546_v37 = vmul.f32 0.5, %v1497_v34  ;;  %1176 = vtanh.f32 %v708_v24 }
 0x116   : > { %v815_v33 = vmul.f32 %v783_v36, %v559_v18  ;;  %v582_v43 = vmul.f32 0.044715, %v1610_v25  ;;  %v770_v38 = vadd.f32 1.0, %v1169_v31  ;;  %v692_v39 = vadd.f32 %v660_v63, %v1556_v16 }
 0x117   : > { %831 = vst [vmem:[%s1577_s4 + $0x10] sm:$0xff] %v799_v21  ;;  %v675_v41 = vadd.f32 %v643_v26, %v1568_v27  ;;  %v659_v42 = vmul.f32 %v627_v14, %v1599_v10  ;;  %v562_v53 = vmul.f32 0.5, %v1500_v35  ;;  %v598_v49 = vmul.f32 0.044715, %v1617_v30 }
 0x118   : > { %v1171_v46 = vpop.eup %1170  ;;  %847 = vst [vmem:[%s1577_s4 + $0x90] sm:$0xff] %v815_v33  ;;  %v614_v32 = vmul.f32 %v582_v43, %v1610_v25  ;;  %v1631_v34 = vadd.f32 %v1448_v44, %v1515_v54  ;;  %v802_v40 = vmul.f32 %v770_v38, %v546_v37  ;;  %v724_v55 = vmul.f32 0.7978846, %v692_v39 }
 0x119   : > { %v786_v47 = vadd.f32 1.0, %v1171_v46  ;;  %v707_v48 = vmul.f32 0.7978846, %v675_v41  ;;  %v545_v58 = vmul.f32 0.5, %v1520_v56  ;;  %v691_v61 = vadd.f32 %v659_v42, %v1599_v10 }
 0x11a   : > { %v646_v60 = vmul.f32 %v614_v32, %v1610_v25  ;;  %v630_v35 = vmul.f32 %v598_v49, %v1617_v30  ;;  %v1173_v0 = vpop.eup %1172  ;;  %834 = vst [vmem:[%s1577_s4 + $0x28] sm:$0xff] %v802_v40  ;;  %1178 = vtanh.f32 %v724_v55  ;;  %v581_v54 = vmul.f32 0.044715, %v1631_v34 }
 0x11b   : > { %v818_v1 = vmul.f32 %v786_v47, %v562_v53  ;;  %v1641_v6 = vadd.f32 %v1448_v44, %v1522_v57  ;;  %v1175_v51 = vpop.eup %1174  ;;  %v769_v4 = vadd.f32 1.0, %v1173_v0  ;;  %1180 = vtanh.f32 %v707_v48 }
 0x11c   : > { %v723_v56 = vmul.f32 0.7978846, %v691_v61  ;;  %v678_v9 = vadd.f32 %v646_v60, %v1610_v25  ;;  %v561_v52 = vmul.f32 0.5, %v1527_v59  ;;  %v785_v15 = vadd.f32 1.0, %v1175_v51 }
 0x11d   : > { %850 = vst [vmem:[%s1577_s4 + $0xa8] sm:$0xff] %v818_v1  ;;  %v662_v5 = vmul.f32 %v630_v35, %v1617_v30  ;;  %v613_v17 = vmul.f32 %v581_v54, %v1631_v34  ;;  %v801_v18 = vmul.f32 %v769_v4, %v545_v58  ;;  %v597_v19 = vmul.f32 0.044715, %v1641_v6 }
 0x11e   : > { %1182 = vtanh.f32 %v723_v56  ;;  %v710_v57 = vmul.f32 0.7978846, %v678_v9  ;;  %v817_v13 = vmul.f32 %v785_v15, %v561_v52  ;;  %v1653_v36 = vadd.f32 %v1533_v2, %v1448_v44 }
 0x11f   : > { %v694_v20 = vadd.f32 %v662_v5, %v1617_v30  ;;  %v645_v21 = vmul.f32 %v613_v17, %v1631_v34  ;;  %v1177_v59 = vpop.eup %1176  ;;  %833 = vst [vmem:[%s1577_s4 + $0x20] sm:$0xff] %v801_v18  ;;  %v629_v24 = vmul.f32 %v597_v19, %v1641_v6  ;;  %v1659_v63 = vadd.f32 %v1535_v3, %v1448_v44 }
 0x120   : > { %1184 = vtanh.f32 %v710_v57  ;;  %v1663_v26 = vadd.f32 %v1448_v44, %v1539_v8  ;;  %849 = vst [vmem:[%s1577_s4 + $0xa0] sm:$0xff] %v817_v13  ;;  %v548_v14 = vmul.f32 0.5, %v1549_v11  ;;  %v772_v31 = vadd.f32 1.0, %v1177_v59 }
 0x121   : > { %v726_v2 = vmul.f32 0.7978846, %v694_v20  ;;  %v677_v33 = vadd.f32 %v645_v21, %v1631_v34  ;;  %v564_v37 = vmul.f32 0.5, %v1556_v16  ;;  %v661_v43 = vmul.f32 %v629_v24, %v1641_v6 }
 0x122   : > { %v584_v38 = vmul.f32 0.044715, %v1653_v36  ;;  %v600_v3 = vmul.f32 0.044715, %v1659_v63  ;;  %v804_v39 = vmul.f32 %v772_v31, %v548_v14  ;;  %v547_v8 = vmul.f32 0.5, %v1568_v27 }
 0x123   : > { %1186 = vtanh.f32 %v726_v2  ;;  %v709_v41 = vmul.f32 0.7978846, %v677_v33  ;;  %v693_v11 = vadd.f32 %v661_v43, %v1641_v6  ;;  %v583_v53 = vmul.f32 0.044715, %v1663_v26 }
 0x124   : > { %v616_v42 = vmul.f32 %v584_v38, %v1653_v36  ;;  %v632_v46 = vmul.f32 %v600_v3, %v1659_v63  ;;  %v1179_v16 = vpop.eup %1178  ;;  %836 = vst [vmem:[%s1577_s4 + $0x38] sm:$0xff] %v804_v39  ;;  %v563_v32 = vmul.f32 0.5, %v1599_v10  ;;  %v1681_v49 = vadd.f32 %v1448_v44, %v1551_v12 }
 0x125   : > { %1188 = vtanh.f32 %v709_v41  ;;  %v1685_v27 = vadd.f32 %v1560_v22, %v1448_v44  ;;  %v1181_v40 = vpop.eup %1180  ;;  %v788_v47 = vadd.f32 1.0, %v1179_v16  ;;  %v725_v55 = vmul.f32 0.7978846, %v693_v11 }
 0x126   : > { %v648_v48 = vmul.f32 %v616_v42, %v1653_v36  ;;  %v664_v58 = vmul.f32 %v632_v46, %v1659_v63  ;;  %v771_v61 = vadd.f32 1.0, %v1181_v40  ;;  %v615_v10 = vmul.f32 %v583_v53, %v1663_v26 }
 0x127   : > { %v599_v60 = vmul.f32 0.044715, %v1681_v49  ;;  %v1693_v12 = vadd.f32 %v1562_v23, %v1448_v44  ;;  %v820_v35 = vmul.f32 %v788_v47, %v564_v37  ;;  %1190 = vtanh.f32 %v725_v55 }
 0x128   : > { %v1183_v22 = vpop.eup %1182  ;;  %v680_v0 = vadd.f32 %v648_v48, %v1653_v36  ;;  %v696_v1 = vadd.f32 %v664_v58, %v1659_v63  ;;  %v803_v54 = vmul.f32 %v771_v61, %v547_v8  ;;  %v647_v4 = vmul.f32 %v615_v10, %v1663_v26 }
 0x129   : > { %v787_v51 = vadd.f32 1.0, %v1183_v22  ;;  %v631_v56 = vmul.f32 %v599_v60, %v1681_v49  ;;  %852 = vst [vmem:[%s1577_s4 + $0xb8] sm:$0xff] %v820_v35  ;;  %v550_v23 = vmul.f32 0.5, %v1610_v25  ;;  %v566_v52 = vmul.f32 0.5, %v1617_v30 }
 0x12a   : > { %v1185_v9 = vpop.eup %1184  ;;  %v712_v15 = vmul.f32 0.7978846, %v680_v0  ;;  %v728_v5 = vmul.f32 0.7978846, %v696_v1  ;;  %835 = vst [vmem:[%s1577_s4 + $0x30] sm:$0xff] %v803_v54  ;;  %v679_v57 = vadd.f32 %v647_v4, %v1663_v26  ;;  %v1709_v25 = vadd.f32 %v1448_v44, %v1570_v28 }
 0x12b   : > { %v819_v17 = vmul.f32 %v787_v51, %v563_v32  ;;  %v774_v18 = vadd.f32 1.0, %v1185_v9  ;;  %v663_v19 = vmul.f32 %v631_v56, %v1681_v49  ;;  %v586_v13 = vmul.f32 0.044715, %v1685_v27 }
 0x12c   : > { %1192 = vtanh.f32 %v712_v15  ;;  %v602_v20 = vmul.f32 0.044715, %v1693_v12  ;;  %v711_v59 = vmul.f32 0.7978846, %v679_v57  ;;  %v549_v31 = vmul.f32 0.5, %v1631_v34 }
 0x12d   : > { %v1187_v30 = vpop.eup %1186  ;;  %851 = vst [vmem:[%s1577_s4 + $0xb0] sm:$0xff] %v819_v17  ;;  %v806_v21 = vmul.f32 %v774_v18, %v550_v23  ;;  %1194 = vtanh.f32 %v728_v5  ;;  %v695_v24 = vadd.f32 %v663_v19, %v1681_v49  ;;  %v618_v2 = vmul.f32 %v586_v13, %v1685_v27 }
 0x12e   : > { %v790_v14 = vadd.f32 1.0, %v1187_v30  ;;  %v634_v33 = vmul.f32 %v602_v20, %v1693_v12  ;;  %1196 = vtanh.f32 %v711_v59  ;;  %v585_v43 = vmul.f32 0.044715, %v1709_v25 }
 0x12f   : > { %v1189_v37 = vpop.eup %1188  ;;  %838 = vst [vmem:[%s1577_s4 + $0x48] sm:$0xff] %v806_v21  ;;  %v727_v28 = vmul.f32 0.7978846, %v695_v24  ;;  %v1720_v38 = vadd.f32 %v1448_v44, %v1572_v29  ;;  %v650_v8 = vmul.f32 %v618_v2, %v1685_v27  ;;  %v565_v41 = vmul.f32 0.5, %v1641_v6 }
 0x130   : > { %v822_v3 = vmul.f32 %v790_v14, %v566_v52  ;;  %v773_v39 = vadd.f32 1.0, %v1189_v37  ;;  %v666_v34 = vmul.f32 %v634_v33, %v1693_v12  ;;  %v617_v11 = vmul.f32 %v585_v43, %v1709_v25 }
 0x131   : > { %1198 = vtanh.f32 %v727_v28  ;;  %v601_v42 = vmul.f32 0.044715, %v1720_v38  ;;  %v1191_v46 = vpop.eup %1190  ;;  %v682_v29 = vadd.f32 %v650_v8, %v1685_v27  ;;  %v1732_v32 = vadd.f32 %v1582_v50, %v1448_v44 }
 0x132   : > { %854 = vst [vmem:[%s1577_s4 + $0xc8] sm:$0xff] %v822_v3  ;;  %v805_v53 = vmul.f32 %v773_v39, %v549_v31  ;;  %v698_v16 = vadd.f32 %v666_v34, %v1693_v12  ;;  %v789_v40 = vadd.f32 1.0, %v1191_v46  ;;  %v649_v47 = vmul.f32 %v617_v11, %v1709_v25 }
 0x133   : > { %v633_v6 = vmul.f32 %v601_v42, %v1720_v38  ;;  %v1738_v55 = vadd.f32 %v1584_v45, %v1448_v44  ;;  %v552_v48 = vmul.f32 0.5, %v1653_v36  ;;  %v714_v58 = vmul.f32 0.7978846, %v682_v29 }
 0x134   : > { %837 = vst [vmem:[%s1577_s4 + $0x40] sm:$0xff] %v805_v53  ;;  %v730_v61 = vmul.f32 0.7978846, %v698_v16  ;;  %v1744_v10 = vadd.f32 %v1448_v44, %v1587_v62  ;;  %v821_v50 = vmul.f32 %v789_v40, %v565_v41  ;;  %v681_v60 = vadd.f32 %v649_v47, %v1709_v25 }
 0x135   : > { %v665_v22 = vmul.f32 %v633_v6, %v1720_v38  ;;  %v588_v35 = vmul.f32 0.044715, %v1732_v32  ;;  %v568_v45 = vmul.f32 0.5, %v1659_v63  ;;  %v551_v1 = vmul.f32 0.5, %v1663_v26 }
 0x136   : > { %v1193_v0 = vpop.eup %1192  ;;  %1200 = vtanh.f32 %v714_v58  ;;  %v604_v36 = vmul.f32 0.044715, %v1738_v55  ;;  %853 = vst [vmem:[%s1577_s4 + $0xc0] sm:$0xff] %v821_v50  ;;  %v713_v62 = vmul.f32 0.7978846, %v681_v60  ;;  %v1759_v5 = vadd.f32 %v1448_v44, %v1593_v7 }
 0x137   : > { %v1195_v54 = vpop.eup %1194  ;;  %v776_v51 = vadd.f32 1.0, %v1193_v0  ;;  %1202 = vtanh.f32 %v730_v61  ;;  %v697_v4 = vadd.f32 %v665_v22, %v1720_v38  ;;  %v620_v9 = vmul.f32 %v588_v35, %v1732_v32 }
 0x138   : > { %v792_v56 = vadd.f32 1.0, %v1195_v54  ;;  %v636_v23 = vmul.f32 %v604_v36, %v1738_v55  ;;  %v587_v63 = vmul.f32 0.044715, %v1744_v10  ;;  %v1197_v26 = vpop.eup %1196  ;;  %1204 = vtanh.f32 %v713_v62 }
 0x139   : > { %v808_v52 = vmul.f32 %v776_v51, %v552_v48  ;;  %v729_v15 = vmul.f32 0.7978846, %v697_v4  ;;  %v775_v18 = vadd.f32 1.0, %v1197_v26  ;;  %v652_v57 = vmul.f32 %v620_v9, %v1732_v32 }
 0x13a   : > { %v824_v17 = vmul.f32 %v792_v56, %v568_v45  ;;  %v668_v19 = vmul.f32 %v636_v23, %v1738_v55  ;;  %v567_v20 = vmul.f32 0.5, %v1681_v49  ;;  %v619_v30 = vmul.f32 %v587_v63, %v1744_v10 }
 0x13b   : > { %v1199_v13 = vpop.eup %1198  ;;  %840 = vst [vmem:[%s1577_s4 + $0x58] sm:$0xff] %v808_v52  ;;  %1206 = vtanh.f32 %v729_v15  ;;  %v603_v21 = vmul.f32 0.044715, %v1759_v5  ;;  %v807_v44 = vmul.f32 %v775_v18, %v551_v1  ;;  %v684_v59 = vadd.f32 %v652_v57, %v1732_v32 }
 0x13c   : > { %856 = vst [vmem:[%s1577_s4 + $0xd8] sm:$0xff] %v824_v17  ;;  %v791_v7 = vadd.f32 1.0, %v1199_v13  ;;  %v700_v24 = vadd.f32 %v668_v19, %v1738_v55  ;;  %v651_v14 = vmul.f32 %v619_v30, %v1744_v10  ;;  %v554_v3 = vmul.f32 0.5, %v1685_v27 }
 0x13d   : > { %v635_v31 = vmul.f32 %v603_v21, %v1759_v5  ;;  %839 = vst [vmem:[%s1577_s4 + $0x50] sm:$0xff] %v807_v44  ;;  %v716_v49 = vmul.f32 0.7978846, %v684_v59  ;;  %v570_v11 = vmul.f32 0.5, %v1693_v12  ;;  %v553_v27 = vmul.f32 0.5, %v1709_v25 }
 0x13e   : > { %v823_v2 = vmul.f32 %v791_v7, %v567_v20  ;;  %v732_v33 = vmul.f32 0.7978846, %v700_v24  ;;  %v683_v37 = vadd.f32 %v651_v14, %v1744_v10  ;;  %v569_v48 = vmul.f32 0.5, %v1720_v38 }
 0x13f   : > { %v667_v28 = vmul.f32 %v635_v31, %v1759_v5  ;;  %1208 = vtanh.f32 %v716_v49  ;;  %v556_v25 = vmul.f32 0.5, %v1732_v32  ;;  %v572_v22 = vmul.f32 0.5, %v1738_v55 }
 0x140   : > { %v1201_v43 = vpop.eup %1200  ;;  %855 = vst [vmem:[%s1577_s4 + $0xd0] sm:$0xff] %v823_v2  ;;  %1210 = vtanh.f32 %v732_v33  ;;  %v715_v34 = vmul.f32 0.7978846, %v683_v37  ;;  %v555_v1 = vmul.f32 0.5, %v1744_v10  ;;  %v571_v51 = vmul.f32 0.5, %v1759_v5 }
 0x141   : > { %v1203_v39 = vpop.eup %1202  ;;  %v778_v8 = vadd.f32 1.0, %v1201_v43  ;;  %v699_v41 = vadd.f32 %v667_v28, %v1759_v5 }
 0x142   : > { %v794_v42 = vadd.f32 1.0, %v1203_v39  ;;  %v1205_v46 = vpop.eup %1204  ;;  %1212 = vtanh.f32 %v715_v34 }
 0x143   : > { %v810_v53 = vmul.f32 %v778_v8, %v554_v3  ;;  %v731_v29 = vmul.f32 0.7978846, %v699_v41  ;;  %v777_v40 = vadd.f32 1.0, %v1205_v46 }
 0x144   : > { %v826_v16 = vmul.f32 %v794_v42, %v570_v11 }
 0x145   : > { %v1207_v47 = vpop.eup %1206  ;;  %842 = vst [vmem:[%s1577_s4 + $0x68] sm:$0xff] %v810_v53  ;;  %1214 = vtanh.f32 %v731_v29  ;;  %v809_v6 = vmul.f32 %v777_v40, %v553_v27 }
 0x146   : > { %858 = vst [vmem:[%s1577_s4 + $0xe8] sm:$0xff] %v826_v16  ;;  %v793_v12 = vadd.f32 1.0, %v1207_v47 }
 0x147   : > { %841 = vst [vmem:[%s1577_s4 + $0x60] sm:$0xff] %v809_v6 }
 0x148   : > { %v825_v58 = vmul.f32 %v793_v12, %v569_v48 }
 0x149   : > { %v1209_v61 = vpop.eup %1208 }
 0x14a   : > { %857 = vst [vmem:[%s1577_s4 + $0xe0] sm:$0xff] %v825_v58  ;;  %v1211_v50 = vpop.eup %1210  ;;  %v780_v60 = vadd.f32 1.0, %v1209_v61 }
 0x14b   : > { %v796_v35 = vadd.f32 1.0, %v1211_v50 }
 0x14c   : > { %v1213_v0 = vpop.eup %1212  ;;  %v812_v45 = vmul.f32 %v780_v60, %v556_v25 }
 0x14d   : > { %v828_v38 = vmul.f32 %v796_v35, %v572_v22  ;;  %v779_v36 = vadd.f32 1.0, %v1213_v0 }
 0x14e   : > { %844 = vst [vmem:[%s1577_s4 + $0x78] sm:$0xff] %v812_v45 }
 0x14f   : > { %v1215_v54 = vpop.eup %1214  ;;  %860 = vst [vmem:[%s1577_s4 + $0xf8] sm:$0xff] %v828_v38  ;;  %v811_v32 = vmul.f32 %v779_v36, %v555_v1 }
 0x150   : > { %v795_v55 = vadd.f32 1.0, %v1215_v54 }
 0x151   : > { %843 = vst [vmem:[%s1577_s4 + $0x70] sm:$0xff] %v811_v32 }
 0x152   : > { %v827_v10 = vmul.f32 %v795_v55, %v571_v51 }
 0x154   : > { %859 = vst [vmem:[%s1577_s4 + $0xf0] sm:$0xff] %v827_v10 }
 0x155   : > { %1229 = shalt.err (!%p1226_p3)
}
 0x156   : > { %s1230_s20 = scalar_lea.hbm %s1796_s9, 4096  ;;  %s1234_s26 = scalar_lea.hbm %s1848_s3, 8192 }
 0x157   : > { %p1231_p4 = scmp.ne.s32.totalorder %s1796_s9, %s1230_s20  ;;  %p1235_p9 = scmp.lt.u32.totalorder %s1796_s9, %s1848_s3 }
 0x158   : > { %p1236_p10 = scmp.lt.u32.totalorder %s1234_s26, %s1230_s20  ;;  %p1238_p12 = scmp.lt.u32.totalorder %s1230_s20, %s1796_s9 }
 0x159   : > { %p1232_p7 = pnand %p1231_p4, %p1341_p5 }
 0x15a   : > { %p1237_p11 = por %p1236_p10, %p1235_p9 }
 0x15b   : > { %p1233_p8 = pneg %p1232_p7 }
 0x15c   : > { %p1239_p13 = por %p1238_p12, %p1237_p11 }
 0x15e   : > { %p1240_p0 = pnand %p1239_p13, %p1233_p8 }
 0x160   : > { %1243 = shalt.err (!%p1240_p0)
}
 0x161   : > { %s1281_s29 = smov 128   ;;  %s1282_s30 = smov 8  }
 0x162   : > { %1111 = dma.vmem_to_hbm [thread:$0]  (%p1341_p5), %s1798_s6, 4096, %s1796_s9, %s1804_s16, %s1281_s29, %s1281_s29, %s1282_s30  }
 0x163 PF: > { %p1117_p1 = scmp.ge.s32.totalorder %s1278_s15, 2  ;;  %s890_s4 = sand.u32 1, %s1266_s12  }
 0x164   : > { %s891_s5 = scalar_lea.sflag [#allocation3], %s890_s4 }
 0x165   : > { %p1114_p2 = pnand %p1117_p1, %p1345_p6 }
 0x167   : > { %1261 = dma.done.wait (!%p1114_p2), %s891_s5, 4096  }
 0x168   : > { %1263 = vsyncadd (!%p1114_p2), %s891_s5, 4294963200  ;;  %p13_p3 = scmp.ge.s32.totalorder %s1328_s18, 4   ;;  %s1851_s12 = smov %s1270_s13 }
 0x169   : > { %s1852_s13 = smov %s1274_s14  ;;  %s1853_s14 = smov %s1339_s21 }
 0x16a   : > { %s1854_s15 = smov %s1328_s18  ;;  %15 = sbr.rel (!%p13_p3) target bundleno = 3 (0x3), region = 67 }
 0x171   :  { %896 = vsyncpa [#allocation3], 1 }
 0x172   :  { %898 = vsyncpa [#allocation3 + $0x1], 1 }

</bundles_post_ra>
